<compile_context>
chip_gen: v7x
topology: tpu7x:2x2x1
jax: 0.10.0
libtpu: 0.0.40
codegen_flags: <defaults>
</compile_context>

<pallas_src>
import numpy as np
import jax
import jax.numpy as jnp
from jax import lax
from jax.experimental import pallas as pl
from jax.experimental.pallas import tpu as pltpu


# ---------------- phase 1: to_basis reduction + diffusion coefficients -------

def to_basis_diffuse_kernel(xm_ref, evecs_ref, e_exp_ref, t_ref, xds_ref):
    """Accumulates x_spec = evecs^T @ (mass*x) over N tiles; on the last tile
    multiplies by the kron-of-exponentials diffusion coefficients."""
    i = pl.program_id(0)

    @pl.when(i == 0)
    def _init():
        xds_ref[...] = jnp.zeros_like(xds_ref)

    # evecs_tile^T @ xm_tile without materializing the transpose: the
    # contraction over the vertex (row) dim of both operands is folded into
    # the MXU matmul.
    xds_ref[...] += lax.dot_general(
        evecs_ref[...], xm_ref[...],
        dimension_numbers=(((0,), (0,)), ((), ())),
        preferred_element_type=jnp.float32)

    @pl.when(i == pl.num_programs(0) - 1)
    def _finalize():
        e_exp = e_exp_ref[...]            # [K, P] kron-expanded eigenvalues
        t = t_ref[...]                    # [P, Cp] diffusion times (padded)
        num_p = e_exp.shape[1]            # static
        # coefs = exp(-(sum_p e_exp[:, p] * t[p, :])): P is tiny, so use a
        # VPU broadcast-sum + EUP exp instead of a length-P MXU contraction.
        logit = e_exp[:, 0:1] * t[0:1, :]
        for p in range(1, num_p):
            logit = logit + e_exp[:, p:p + 1] * t[p:p + 1, :]
        xds_ref[...] = jnp.exp(-logit) * xds_ref[...]


# ---------------- phase 2: from_basis + channel mixer + tanh -----------------

def from_basis_mixer_kernel(evecs_ref, xds_ref, w_ref, b_ref, out_ref):
    x_diffuse = jnp.dot(evecs_ref[...], xds_ref[...],
                        preferred_element_type=jnp.float32)       # [tile_n, Cp]
    out_ref[...] = jnp.tanh(
        jnp.dot(x_diffuse, w_ref[...], preferred_element_type=jnp.float32)
        + b_ref[...])


# ---------------------------------- wrapper -----------------------------------

def _round_up(x, m):
    return ((x + m - 1) // m) * m


def cpgnn_block_forward(x_in, mass, evecs, evals_list, diffusion_time,
                        w_mix, b_mix, *, tile_n=None, lane=128):
    """Glue: kron-expand eigenvalues, pad channels lane-dense, run 2 kernels."""
    N, C = x_in.shape
    K = evecs.shape[1]
    P = len(evals_list)
    sizes = [int(e.shape[0]) for e in evals_list]
    assert int(np.prod(sizes)) == K, "basis size must equal prod(num_nodes)"

    # e_exp[k, p] = evals[p][idx_p(k)] with kron ordering.
    cols = []
    for p, e in enumerate(evals_list):
        inner = int(np.prod(sizes[p + 1:])) if p + 1 < P else 1
        outer = int(np.prod(sizes[:p])) if p > 0 else 1
        cols.append(jnp.tile(jnp.repeat(e.astype(jnp.float32), inner), outer))
    e_exp_kp = jnp.stack(cols, axis=1)                          # [K, P]

    # Lane-dense channel padding: padded columns stay exactly zero through the
    # whole pipeline (zero x columns, zero W/b padding) and are sliced off.
    Cp = _round_up(max(C, lane), lane)

    # Fold the mass multiply into x here (removes a [N,1] padded kernel input).
    xm = x_in.astype(jnp.float32) * mass.astype(jnp.float32)[:, None]
    xm = jnp.pad(xm, ((0, 0), (0, Cp - C)))
    t_pad = jnp.pad(diffusion_time.astype(jnp.float32), ((0, 0), (0, Cp - C)))
    w_pad = jnp.zeros((Cp, Cp), jnp.float32).at[:C, :C].set(
        w_mix.astype(jnp.float32).T)                            # use x @ W^T
    b_pad = jnp.pad(b_mix.astype(jnp.float32), (0, Cp - C)).reshape(1, Cp)
    evecs_f32 = evecs.astype(jnp.float32)

    # N-tile size: multiple of 8 (f32 sublane), sized so double-buffered
    # evecs / x / out tiles stay well inside the smallest default scoped-VMEM
    # budget (and comfortably inside v7x's 64 MiB VMEM).
    if tile_n is None:
        budget = 12 << 20
        per_row_bytes = (K + 2 * Cp) * 4 * 2   # evecs + x/out tiles, 2 buffers
        tile_n = max(8, min(512, budget // per_row_bytes))
    tile_n = max(8, _round_up(int(tile_n), 8))
    tile_n = min(tile_n, _round_up(N, 8))

    # Pad N to a tile multiple: zero rows add nothing to the reduction and the
    # corresponding output rows are sliced off.
    Np = _round_up(N, tile_n)
    if Np != N:
        xm = jnp.pad(xm, ((0, Np - N), (0, 0)))
        evecs_f32 = jnp.pad(evecs_f32, ((0, Np - N), (0, 0)))
    n_tiles = Np // tile_n

    # Phase 1: reduction over N tiles into the resident [K, Cp] output block.
    x_diff_spec = pl.pallas_call(
        to_basis_diffuse_kernel,
        out_shape=jax.ShapeDtypeStruct((K, Cp), jnp.float32),
        grid=(n_tiles,),
        in_specs=[
            pl.BlockSpec((tile_n, Cp), lambda i: (i, 0)),      # mass * x
            pl.BlockSpec((tile_n, K), lambda i: (i, 0)),       # evecs
            pl.BlockSpec((K, P), lambda i: (0, 0)),            # kron eigenvalues
            pl.BlockSpec((P, Cp), lambda i: (0, 0)),           # diffusion times
        ],
        out_specs=pl.BlockSpec((K, Cp), lambda i: (0, 0)),
        compiler_params=pltpu.CompilerParams(
            dimension_semantics=("arbitrary",)),               # reduction axis
    )(xm, evecs_f32, e_exp_kp, t_pad)

    # Phase 2: independent N tiles — from_basis, channel mixer, tanh.
    out_pad = pl.pallas_call(
        from_basis_mixer_kernel,
        out_shape=jax.ShapeDtypeStruct((Np, Cp), jnp.float32),
        grid=(n_tiles,),
        in_specs=[
            pl.BlockSpec((tile_n, K), lambda i: (i, 0)),       # evecs
            pl.BlockSpec((K, Cp), lambda i: (0, 0)),           # coefs * x_spec
            pl.BlockSpec((Cp, Cp), lambda i: (0, 0)),          # W_mix^T (padded)
            pl.BlockSpec((1, Cp), lambda i: (0, 0)),           # bias (padded)
        ],
        out_specs=pl.BlockSpec((tile_n, Cp), lambda i: (i, 0)),
        compiler_params=pltpu.CompilerParams(
            dimension_semantics=("parallel",)),                # megacore-shardable
    )(evecs_f32, x_diff_spec, w_pad, b_pad)

    return out_pad[:N, :C]


# ---------------------------------- reference ---------------------------------

def reference_forward(x_in, mass, evecs, evals_list, diffusion_time,
                      w_mix, b_mix):
    """Plain-JAX reference matching the PyTorch forward."""
    x_spec = evecs.T @ (x_in * mass[:, None])
    C = x_in.shape[-1]
    cols = []
    for c in range(C):
        ek = jnp.exp(-diffusion_time[0, c] * evals_list[0])
        for p in range(1, len(evals_list)):
            ek = jnp.kron(ek, jnp.exp(-diffusion_time[p, c] * evals_list[p]))
        cols.append(ek)
    coefs = jnp.stack(cols, axis=1)
    x_diffuse = evecs @ (coefs * x_spec)
    return jnp.tanh(x_diffuse @ w_mix.T + b_mix[None, :])


if __name__ == "__main__":
    # Module hyperparameters (small, consistent with the forward):
    num_nodes = [4, 4]            # P = 2 product-graph factors
    P = len(num_nodes)
    N = int(np.prod(num_nodes))   # 16 vertices in the product graph
    K = N                         # full spectral basis
    C_width = 32

    key = jax.random.PRNGKey(0)
    k1, k2, k3, k4, k5, k6, k7, k8 = jax.random.split(key, 8)

    x_in = jax.random.normal(k1, (N, C_width), dtype=jnp.float32)
    mass = jax.random.uniform(k2, (N,), dtype=jnp.float32, minval=0.5, maxval=1.5)
    evecs = jax.random.normal(k3, (N, K), dtype=jnp.float32)
    evals_list = [
        jax.random.uniform(k4, (num_nodes[0],), dtype=jnp.float32, minval=0.0, maxval=2.0),
        jax.random.uniform(k5, (num_nodes[1],), dtype=jnp.float32, minval=0.0, maxval=2.0),
    ]

    # Parameters (mirroring nn.init.uniform / nn.Linear shapes):
    diffusion_time = jax.random.uniform(k6, (P, C_width), dtype=jnp.float32)  # single_t=False
    bound = 1.0 / np.sqrt(C_width)
    w_mix = jax.random.uniform(k7, (C_width, C_width), dtype=jnp.float32,
                               minval=-bound, maxval=bound)
    b_mix = jax.random.uniform(k8, (C_width,), dtype=jnp.float32,
                               minval=-bound, maxval=bound)

    # tile_n=8 -> 2 N-tiles, exercising both the reduction accumulator and the
    # parallel phase-2 grid even at this toy size.
    out = cpgnn_block_forward(x_in, mass, evecs, evals_list, diffusion_time,
                              w_mix, b_mix, tile_n=8)
    out = jax.block_until_ready(out)

    ref = reference_forward(x_in, mass, evecs, evals_list, diffusion_time,
                            w_mix, b_mix)
    np.testing.assert_allclose(np.asarray(out), np.asarray(ref),
                               rtol=1e-5, atol=1e-5)

    print("KERNEL_OK")
</pallas_src>

<mosaic_0001>
module attributes {stable_mosaic.version = 11 : i64} {
  func.func @to_basis_diffuse_kernel(%arg0: i32, %arg1: memref<8x128xf32, #tpu.memory_space<vmem>>, %arg2: memref<8x16xf32, #tpu.memory_space<vmem>>, %arg3: memref<16x2xf32, #tpu.memory_space<vmem>>, %arg4: memref<2x128xf32, #tpu.memory_space<vmem>>, %arg5: memref<16x128xf32, #tpu.memory_space<vmem>>) attributes {dimension_semantics = [#tpu.dimension_semantics<arbitrary>], iteration_bounds = array<i64: 2>, scalar_prefetch = 0 : i64, scratch_operands = 0 : i64, tpu.core_type = #tpu.core_type<tc>, window_params = [{transform_indices = @transform_0, window_bounds = array<i64: 8, 128>}, {transform_indices = @transform_1, window_bounds = array<i64: 8, 16>}, {pipeline_mode = #tpu.pipeline_mode<synchronous>, transform_indices = @transform_2, window_bounds = array<i64: 16, 2>}, {pipeline_mode = #tpu.pipeline_mode<synchronous>, transform_indices = @transform_3, window_bounds = array<i64: 2, 128>}, {pipeline_mode = #tpu.pipeline_mode<synchronous>, transform_indices = @transform_4, window_bounds = array<i64: 16, 128>}]} {
    %c0_i32 = arith.constant 0 : i32
    %0 = arith.cmpi eq, %arg0, %c0_i32 : i32
    %1 = arith.extui %0 : i1 to i32
    %c0_i32_0 = arith.constant 0 : i32
    %2 = arith.cmpi ne, %1, %c0_i32_0 : i32
    scf.if %2 {
      %cst_9 = arith.constant 0.000000e+00 : f32
      %12 = vector.broadcast %cst_9 : f32 to vector<16x128xf32>
      %c0_10 = arith.constant 0 : index
      %c0_11 = arith.constant 0 : index
      %13 = vector.load %arg5[%c0_10, %c0_11] : memref<16x128xf32, #tpu.memory_space<vmem>>, vector<16x128xf32>
      tpu.vector_store %arg5[%c0_10, %c0_11], %12 {strides = array<i32>} : memref<16x128xf32, #tpu.memory_space<vmem>>, vector<16x128xf32>,
    } else {
    }
    %c0 = arith.constant 0 : index
    %c0_1 = arith.constant 0 : index
    %3 = vector.load %arg5[%c0, %c0_1] : memref<16x128xf32, #tpu.memory_space<vmem>>, vector<16x128xf32>
    %c0_2 = arith.constant 0 : index
    %c0_3 = arith.constant 0 : index
    %4 = vector.load %arg2[%c0_2, %c0_3] : memref<8x16xf32, #tpu.memory_space<vmem>>, vector<8x16xf32>
    %c0_4 = arith.constant 0 : index
    %c0_5 = arith.constant 0 : index
    %5 = vector.load %arg1[%c0_4, %c0_5] : memref<8x128xf32, #tpu.memory_space<vmem>>, vector<8x128xf32>
    %cst = arith.constant dense<0.000000e+00> : vector<16x128xf32>
    %6 = tpu.matmul %4, %5, %cst {dimension_numbers = #tpu.dot_dimension_numbers<[0], [0], [1], [1], [0, 1, 1, 1], [], []>} : vector<8x16xf32>, vector<8x128xf32>, vector<16x128xf32> -> vector<16x128xf32>
    %7 = arith.addf %3, %6 : vector<16x128xf32>
    %c0_6 = arith.constant 0 : index
    %c0_7 = arith.constant 0 : index
    %8 = vector.load %arg5[%c0_6, %c0_7] : memref<16x128xf32, #tpu.memory_space<vmem>>, vector<16x128xf32>
    tpu.vector_store %arg5[%c0_6, %c0_7], %7 {strides = array<i32>} : memref<16x128xf32, #tpu.memory_space<vmem>>, vector<16x128xf32>,
    %c1_i32 = arith.constant 1 : i32
    %9 = arith.cmpi eq, %arg0, %c1_i32 : i32
    %10 = arith.extui %9 : i1 to i32
    %c0_i32_8 = arith.constant 0 : i32
    %11 = arith.cmpi ne, %10, %c0_i32_8 : i32
    scf.if %11 {
      %c0_9 = arith.constant 0 : index
      %c0_10 = arith.constant 0 : index
      %12 = vector.load %arg3[%c0_9, %c0_10] : memref<16x2xf32, #tpu.memory_space<vmem>>, vector<16x2xf32>
      %c0_11 = arith.constant 0 : index
      %c0_12 = arith.constant 0 : index
      %13 = vector.load %arg4[%c0_11, %c0_12] : memref<2x128xf32, #tpu.memory_space<vmem>>, vector<2x128xf32>
      %14 = vector.extract_strided_slice %12 {offsets = [0, 0], sizes = [16, 1], strides = [1, 1]} : vector<16x2xf32> to vector<16x1xf32>
      %15 = vector.extract_strided_slice %13 {offsets = [0, 0], sizes = [1, 128], strides = [1, 1]} : vector<2x128xf32> to vector<1x128xf32>
      %16 = vector.broadcast %14 : vector<16x1xf32> to vector<16x128xf32>
      %17 = vector.broadcast %15 : vector<1x128xf32> to vector<16x128xf32>
      %18 = arith.mulf %16, %17 : vector<16x128xf32>
      %19 = vector.extract_strided_slice %12 {offsets = [0, 1], sizes = [16, 1], strides = [1, 1]} : vector<16x2xf32> to vector<16x1xf32>
      %20 = vector.extract_strided_slice %13 {offsets = [1, 0], sizes = [1, 128], strides = [1, 1]} : vector<2x128xf32> to vector<1x128xf32>
      %21 = vector.broadcast %19 : vector<16x1xf32> to vector<16x128xf32>
      %22 = vector.broadcast %20 : vector<1x128xf32> to vector<16x128xf32>
      %23 = arith.mulf %21, %22 : vector<16x128xf32>
      %24 = arith.addf %18, %23 : vector<16x128xf32>
      %cst_13 = arith.constant 0.000000e+00 : f32
      %25 = vector.broadcast %cst_13 : f32 to vector<16x128xf32>
      %26 = arith.subf %25, %24 : vector<16x128xf32>
      %27 = math.exp %26 : vector<16x128xf32>
      %c0_14 = arith.constant 0 : index
      %c0_15 = arith.constant 0 : index
      %28 = vector.load %arg5[%c0_14, %c0_15] : memref<16x128xf32, #tpu.memory_space<vmem>>, vector<16x128xf32>
      %29 = arith.mulf %27, %28 : vector<16x128xf32>
      %c0_16 = arith.constant 0 : index
      %c0_17 = arith.constant 0 : index
      %30 = vector.load %arg5[%c0_16, %c0_17] : memref<16x128xf32, #tpu.memory_space<vmem>>, vector<16x128xf32>
      tpu.vector_store %arg5[%c0_16, %c0_17], %29 {strides = array<i32>} : memref<16x128xf32, #tpu.memory_space<vmem>>, vector<16x128xf32>,
    } else {
    }
    return
  }
  func.func @transform_0(%arg0: i32) -> (i32, i32) {
    %c0_i32 = arith.constant 0 : i32
    %c0_i32_0 = arith.constant 0 : i32
    return %arg0, %c0_i32 : i32, i32
  }
  func.func @transform_1(%arg0: i32) -> (i32, i32) {
    %c0_i32 = arith.constant 0 : i32
    %c0_i32_0 = arith.constant 0 : i32
    return %arg0, %c0_i32 : i32, i32
  }
  func.func @transform_2(%arg0: i32) -> (i32, i32) {
    %c0_i32 = arith.constant 0 : i32
    %c0_i32_0 = arith.constant 0 : i32
    %c0_i32_1 = arith.constant 0 : i32
    return %c0_i32, %c0_i32_0 : i32, i32
  }
  func.func @transform_3(%arg0: i32) -> (i32, i32) {
    %c0_i32 = arith.constant 0 : i32
    %c0_i32_0 = arith.constant 0 : i32
    %c0_i32_1 = arith.constant 0 : i32
    return %c0_i32, %c0_i32_0 : i32, i32
  }
  func.func @transform_4(%arg0: i32) -> (i32, i32) {
    %c0_i32 = arith.constant 0 : i32
    %c0_i32_0 = arith.constant 0 : i32
    %c0_i32_1 = arith.constant 0 : i32
    return %c0_i32, %c0_i32_0 : i32, i32
  }
}

</mosaic_0001>

<bundles_post_ra>
// kernel: tpu_custom_call.1
= control target key start
LH: loop header
LB: loop body
LE: loop exit
PB: predicated region body
PF: predicated region fallthrough
CT: control target
= control target key end

     0   :  { %9 = vsyncpa [#allocation3], 0  ;;  %s820_s0 = inlined_call_operand.vmem [shape: f32[16,128], index: 0, kind: input, shape index: {}]   ;;  %s821_s1 = inlined_call_operand.hbm [shape: f32[16,16], index: 1, kind: input, shape index: {}]   ;;  %s822_s2 = inlined_call_operand.vmem [shape: f32[16,2], index: 2, kind: input, shape index: {}]   ;;  %s823_s3 = inlined_call_operand.vmem [shape: f32[2,128], index: 3, kind: input, shape index: {}]   ;;  %s824_s4 = inlined_call_operand.hbm [shape: f32[16,128], index: 4, kind: output, shape index: {}]  }
   0x1   :  { %11 = vsyncpa [#allocation3 + $0x1], 0 }
   0x2   :  { %12 = vsyncpa [#allocation4], 0  ;;  %s679_s15 = smov 0   ;;  %s681_s16 = smov 0  }
   0x3   :  { %s683_s17 = smov 0   ;;  %s685_s18 = smov 0  }
   0x4 LB: > { %s698_s19 = sadd.s32 4294967295, %s645_s18   ;;  %s701_s20 = sadd.s32 1, %s645_s18   ;;  %s645_s18 = sphi %s685_s18, %s832_s18   ;;  %s641_s17 = sphi %s683_s17, %s831_s17   ;;  %s637_s16 = sphi %s681_s16, %s830_s16   ;;  %s633_s15 = sphi %s679_s15, %s829_s15  }
   0x5   : > { %s48_s21 = ssub.s32 %s645_s18, %s701_s20  ;;  %s51_s22 = sadd.s32 1, %s641_s17 }
   0x6   : > { %p49_p0 = scmp.eq.s32.totalorder %s48_s21, 0  ;;  %p58_p1 = scmp.ne.s32.totalorder %s641_s17, %s637_s16 }
   0x7   : > { %p59_p2 = scmp.eq.s32.totalorder %s645_s18, 0  ;;  %p64_p3 = scmp.ne.s32.totalorder %s637_s16, %s633_s15 }
   0x8   : > { %s711_s23 = scalar_select %p49_p0, %s641_s17, %s51_s22  }
   0x9   : > { %p60_p4 = por %p59_p2, %p58_p1  ;;  %p65_p5 = scmp.eq.s32.totalorder %s698_s19, 0 }
   0xa   : > { %p502_p6 = scmp.lt.s32.totalorder %s645_s18, 2  ;;  %s164_s25 = sand.u32 1, %s641_s17  }
   0xb   : > { %p715_p7 = por %p65_p5, %p64_p3  ;;  %s471_s26 = sshll.u32 %s164_s25, 3 }
   0xc   : > { %s472_s27 = sshll.u32 %s645_s18, 7  ;;  %s168_s5 = scalar_lea.vmem [#allocation2], %s471_s26 }
   0xd   : > { %s724_s30 = scalar_lea.hbm %s821_s1, %s472_s27  ;;  %s175_s6 = sshll.u32 %s168_s5, 4  ;;  %s726_s6 = int_to_ptr.vmem [resolvable:$true] %s175_s6 }
   0xe   : > { %p728_p8 = pnand %p502_p6, %p60_p4  ;;  %s165_s8 = scalar_lea.sflag [#allocation3], %s164_s25 }
   0xf   : > { %s551_s9 = scalar_lea.hbm %s724_s30, 128  ;;  %s556_s12 = scalar_lea.hbm %s821_s1, 256 }
  0x10   : > { %p552_p11 = scmp.ne.s32.totalorder %s724_s30, %s551_s9  ;;  %p553_p12 = pneg %p728_p8 }
  0x11   : > { %p557_p1 = scmp.lt.u32.totalorder %s724_s30, %s821_s1  ;;  %p558_p2 = scmp.lt.u32.totalorder %s556_s12, %s551_s9 }
  0x12   : > { %p554_p13 = pnand %p553_p12, %p552_p11  ;;  %p560_p4 = scmp.lt.u32.totalorder %s551_s9, %s724_s30 }
  0x13   : > { %p559_p3 = por %p558_p2, %p557_p1 }
  0x14   : > { %p555_p0 = pneg %p554_p13 }
  0x15   : > { %p561_p5 = por %p560_p4, %p559_p3 }
  0x17   : > { %p562_p6 = pnand %p561_p5, %p555_p0 }
  0x19   : > { %565 = shalt.err (!%p562_p6)
}
  0x1a   : > { %s566_s15 = scalar_lea.vmem %s726_s6, 128  ;;  %s647_s21 = smov [#allocation2]  }
  0x1b   : > { %p567_p11 = scmp.ne.s32.totalorder %s726_s6, %s566_s15  ;;  %s571_s22 = sshll.u32 %s647_s21, 4  ;;  %s572_s22 = int_to_ptr.vmem [resolvable:$false] %s571_s22 }
  0x1c   : > { %s573_s25 = scalar_lea.vmem %s572_s22, 256  ;;  %p574_p10 = scmp.lt.s32.totalorder %s726_s6, %s572_s22 }
  0x1d   : > { %p569_p13 = pnand %p567_p11, %p553_p12  ;;  %p575_p1 = scmp.lt.s32.totalorder %s573_s25, %s566_s15 }
  0x1f   : > { %p570_p9 = pneg %p569_p13  ;;  %p576_p2 = por %p575_p1, %p574_p10 }
  0x21   : > { %p577_p3 = pnand %p576_p2, %p570_p9 }
  0x23   : > { %580 = shalt.err (!%p577_p3)
}
  0x24   : > { %501 = dma.hbm_to_vmem [thread:$0]  (!%p728_p8), %s724_s30, 128, %s726_s6, %s165_s8  }
  0x25   : > { %p827_p0 = scmp.lt.s32.totalorder %s645_s18, 3  ;;  %p828_p4 = scmp.ge.s32.totalorder %s645_s18, 1 }
  0x27   : > { %p181_p12 = pnand %p828_p4, %p827_p0 }
  0x28   : > { %s186_s26 = sand.u32 (!%p181_p12), 1, %s637_s16  }
  0x29   : > { %184 = sbr.rel (%p181_p12) target bundleno = 445 (0x1bd), region = 36  ;;  %s474_s27 = sshll.u32 (!%p181_p12), %s186_s26, 3 }
  0x2a   : > { %s187_s28 = scalar_lea.sflag (!%p181_p12), [#allocation3], %s186_s26  ;;  %s190_s29 = scalar_lea.vmem (!%p181_p12), [#allocation2], %s474_s27 }
  0x30   : > { %624 = dma.done.wait (%p715_p7), %s187_s28, 128  }
  0x31   : > { %626 = vsyncadd (%p715_p7), %s187_s28, 4294967168  ;;  %p214_p9 = scmp.lt.s32.totalorder %s698_s19, 1  ;;  %p476_p8 = scmp.ne.s32.totalorder %s698_s19, 0 }
  0x32   : > { %v648_v0 = vmov (!%p476_p8), 0.0  }
  0x33   : > { %s215_s5 = scalar_select %p214_p9, %s698_s19, 1 }
  0x34   : > { %221 = sbr.rel (%p476_p8) target bundleno = 59 (0x3b), region = 44  ;;  %222 = vst [vmem:[#allocation5] sm:$0xff] (!%p476_p8), %v648_v0  ;;  %223 = vst [vmem:[#allocation5 + $0x8] sm:$0xff] (!%p476_p8), %v648_v0 }
  0x35   : > { %s475_s30 = sshll.u32 %s215_s5, 3 }
  0x36   : > { %s217_s7 = scalar_lea.vmem %s820_s0, %s475_s30 }
  0x3b PF: > { %v226_v1 = vld [vmem:[%s190_s29] sm:$0xff]  ;;  %vm260_vm0 = vcmask 64512   ;;  %v225_v5 = vld [vmem:[#allocation5 + $0x8] sm:$0xff]  ;;  %v224_v6 = vld [vmem:[#allocation5] sm:$0xff]  ;;  %p479_p7 = scmp.ne.s32.totalorder %s698_s19, 1 }
  0x3c   : > { %228 = vxpose.xlu0.b32.start.end [1/1] (short) (narrow) %v226_v1, 16  ;;  %v227_v2 = vld [vmem:[%s217_s7] sm:$0xff]  ;;  %v649_v12 = vmov (!%p479_p7), 1   ;;  %v650_v13 = vmov (!%p479_p7), 0   ;;  %v351_v14 = vld [vmem:[%s822_s2 + $0x8] sm:$0xff] (!%p479_p7)  ;;  %v363_v15 = vlaneseq (!%p479_p7) }
  0x3d   : > { %487 = vmatprep.subr.mxu0 %v227_v2  ;;  %v350_v11 = vld [vmem:[%s822_s2] sm:$0xff] (!%p479_p7)  ;;  %545 = vset.pattern.permute.xlu1 (!%p479_p7), %v649_v12 }
  0x3e   : > { %488 = vmatpush3.msra.mxu0 %v227_v2  ;;  %370 = vperm.xlu1 (!%p479_p7), %545, %v350_v11   ;;  %v364_v16 = vshrl.u32 (!%p479_p7), %v363_v15, 7  ;;  %v352_v19 = vld [vmem:[%s823_s3] sm:$0x3] (!%p479_p7) }
  0x40   : > { %v379_v17 = vsub.s32 (!%p479_p7), 1, %v364_v16  ;;  %v365_v18 = vsub.s32 (!%p479_p7), 0, %v364_v16 }
  0x42   : > { %374 = vperm.xlu1 (!%p479_p7), %545, %v351_v14   ;;  %v380_v20 = vrot.slane (!%p479_p7), %v352_v19, %v379_v17  ;;  %v366_v21 = vrot.slane (!%p479_p7), %v352_v19, %v365_v18 }
  0x65   : > { %544 = vset.pattern.permute.xlu0 (!%p479_p7), %v650_v13 }
  0x69   : > { %355 = vperm.xlu0 (!%p479_p7), %544, %v350_v11  }
  0x6d   : > { %360 = vperm.xlu0 (!%p479_p7), %544, %v351_v14  }
  0x71   : > { %546 = vset.pattern.permute.xlu0 (!%p479_p7), %v649_v12 }
  0xbc   : > { %v244_v3 = vpop.trf.xlu0 }
  0xbd   : > { %489 = vmatprep.mubr.msk.f32.mxu0 %vm260_vm0, %v244_v3  ;;  %v371_v22 = vpop.permute.xlu1 (!%p479_p7), %370 }
  0xbe   : > { %v381_v24 = vmul.f32 (!%p479_p7), %v380_v20, %v371_v22 }
  0xc0   : > { %v245_v4 = vpop.trf.xlu0 }
  0xc1   : > { %490 = vmatmul.mubr.msk.f32.vlgmr.msra.gmra.mrb[0].mxu0 %vm260_vm0, %v245_v4  ;;  %v375_v27 = vpop.permute.xlu1 (!%p479_p7), %374 }
  0xc2   : > { %v382_v30 = vmul.f32 (!%p479_p7), %v380_v20, %v375_v27 }
  0xe8   : > { %v356_v23 = vpop.permute.xlu0 (!%p479_p7), %355 }
  0xe9   : > { %v367_v25 = vmul.f32 (!%p479_p7), %v366_v21, %v356_v23 }
  0xeb   : > { %v383_v26 = vadd.f32 (!%p479_p7), %v381_v24, %v367_v25 }
  0xec   : > { %v361_v28 = vpop.permute.xlu0 (!%p479_p7), %360 }
  0xed   : > { %v385_v29 = vsub.f32 (!%p479_p7), 0.0, %v383_v26  ;;  %v368_v31 = vmul.f32 (!%p479_p7), %v366_v21, %v361_v28 }
  0xef   : > { %v387_v32 = vmul.f32 (!%p479_p7), 1.442695, %v385_v29  ;;  %v384_v33 = vadd.f32 (!%p479_p7), %v382_v30, %v368_v31 }
  0xf1   : > { %547 = vpow2.f32 (!%p479_p7), %v387_v32  ;;  %v386_v34 = vsub.f32 (!%p479_p7), 0.0, %v384_v33 }
  0xf3   : > { %v389_v35 = vmul.f32 (!%p479_p7), 1.442695, %v386_v34 }
  0xf5   : > { %549 = vpow2.f32 (!%p479_p7), %v389_v35 }
  0xfb   : > { %v548_v37 = vpop.eup (!%p479_p7), %547 }
  0xff   : > { %v550_v40 = vpop.eup (!%p479_p7), %549 }
 0x192   : > { %349 = sbr.rel (%p479_p7) target bundleno = 419 (0x1a3), region = 48 }
 0x194   : > { %v491_v7 = vpop.f32.mrb[0].mxu0 }
 0x195   : > { %v343_v8 = vadd.f32 %v491_v7, %v225_v5  ;;  %v333_v9 = vpop.f32.mrb[1].mxu0 }
 0x196   : > { %v342_v10 = vadd.f32 %v333_v9, %v224_v6 }
 0x197   : > { %345 = vst [vmem:[#allocation5 + $0x8] sm:$0xff] %v343_v8 }
 0x198   : > { %344 = vst [vmem:[#allocation5] sm:$0xff] %v342_v10 }
 0x19e   : > { %v392_v39 = vld [vmem:[#allocation5 + $0x8] sm:$0xff] }
 0x19f   : > { %v391_v36 = vld [vmem:[#allocation5] sm:$0xff]  ;;  %v394_v41 = vmul.f32 %v550_v40, %v392_v39 }
 0x1a0   : > { %v393_v38 = vmul.f32 %v548_v37, %v391_v36 }
 0x1a1   : > { %396 = vst [vmem:[#allocation5 + $0x8] sm:$0xff] %v394_v41 }
 0x1a2   : > { %395 = vst [vmem:[#allocation5] sm:$0xff] %v393_v38 }
 0x1a3 PF: > { %p503_p10 = scmp.eq.s32.totalorder %s698_s19, 1  ;;  %s651_s13 = smov [#allocation5]  }
 0x1a4   : > { %s403_s14 = sshll.u32 %s651_s13, 4  ;;  %s404_s14 = int_to_ptr.vmem [resolvable:$true] %s403_s14 }
 0x1a5   : > { %s581_s15 = scalar_lea.vmem %s404_s14, 256  ;;  %p588_p13 = scmp.lt.s32.totalorder %s404_s14, %s404_s14 }
 0x1a6   : > { %p582_p5 = scmp.ne.s32.totalorder %s404_s14, %s581_s15  ;;  %p589_p1 = scmp.lt.s32.totalorder %s581_s15, %s581_s15 }
 0x1a8   : > { %p583_p6 = pnand %p582_p5, %p503_p10  ;;  %p590_p2 = por %p589_p1, %p588_p13 }
 0x1aa   : > { %p584_p11 = pneg %p583_p6 }
 0x1ac   : > { %p591_p3 = pnand %p590_p2, %p584_p11 }
 0x1ae   : > { %594 = shalt.err (!%p591_p3)
}
 0x1af   : > { %s595_s25 = scalar_lea.hbm %s824_s4, 256 }
 0x1b0   : > { %p596_p0 = scmp.ne.s32.totalorder %s824_s4, %s595_s25  ;;  %p601_p9 = scmp.lt.u32.totalorder %s595_s25, %s824_s4 }
 0x1b2   : > { %p597_p4 = pnand %p596_p0, %p503_p10 }
 0x1b4   : > { %p598_p12 = pneg %p597_p4 }
 0x1b6   : > { %p603_p8 = pnand %p601_p9, %p598_p12 }
 0x1b8   : > { %606 = shalt.err (!%p603_p8)
}
 0x1b9   : > { %s652_s5 = smov 128   ;;  %s653_s30 = smov 8  }
 0x1ba   : > { %495 = dma.vmem_to_hbm [thread:$0]  (%p503_p10), %s404_s14, 256, %s824_s4, [#allocation4], %s652_s5, %s652_s5, %s653_s30  }
 0x1bb   : > { %628 = dma.done.wait (%p503_p10), [#allocation4], 256  }
 0x1bc   : > { %630 = vsyncadd (%p503_p10), [#allocation4], 4294967040 }
 0x1bd PF: > { %p15_p7 = scmp.ge.s32.totalorder %s701_s20, 4   ;;  %s829_s15 = smov %s637_s16 }
 0x1be   : > { %s830_s16 = smov %s641_s17  ;;  %s831_s17 = smov %s711_s23 }
 0x1bf   : > { %s832_s18 = smov %s701_s20  ;;  %17 = sbr.rel (!%p15_p7) target bundleno = 4 (0x4), region = 84 }
 0x1c6   :  { %419 = vsyncpa [#allocation3], 1 }
 0x1c7   :  { %421 = vsyncpa [#allocation3 + $0x1], 1 }
 0x1c8   :  { %422 = vsyncpa [#allocation4], 1 }
 0x1c9   :  { %424 = vsyncpa [#allocation4 + $0x1], 1 }

</bundles_post_ra>
